<compile_context>
chip_gen: v6e
topology: v6e:2x2x1
jax: 0.10.0
libtpu: 0.0.40
codegen_flags: <defaults>
</compile_context>

<pallas_src>
import jax
import jax.numpy as jnp
from jax.experimental import pallas as pl
from jax.experimental.pallas import tpu as pltpu


def critic_kernel(xt_ref, w1_ref, b1_ref, w2_ref, b2_ref, w3_ref, o_ref):
    cdt = w1_ref.dtype                                   # f32 or bf16 (MXU input dtype)
    xt = xt_ref[...]                                      # (D, TM)  batch on lanes
    # Layer 1: (H, D) @ (D, TM) -> (H, TM), f32 accumulation.
    h1 = jnp.dot(w1_ref[...], xt, preferred_element_type=jnp.float32)
    h1 = jnp.maximum(h1 + b1_ref[...], 0.0)               # f32 bias + ReLU (VPU)
    # Layer 2: (H, H) @ (H, TM) -> (H, TM), f32 accumulation.
    h2 = jnp.dot(w2_ref[...], h1.astype(cdt), preferred_element_type=jnp.float32)
    h2 = jnp.maximum(h2 + b2_ref[...], 0.0)
    # Final Linear(H, 1): VPU multiply against the (H, 1) weight column plus a
    # sublane reduction -- avoids an almost-empty N=1 MXU pass.
    v = jnp.sum(h2 * w3_ref[...].astype(jnp.float32), axis=0, keepdims=True)  # (1, TM)
    o_ref[...] = v.astype(o_ref.dtype)                    # lane-dense (1, TM) store


def critic_forward(x, params, *, tm=None, use_bf16=False):
    """x: (B, input_dim) float32.  Returns (B,) float32 (squeeze(-1) like PyTorch).

    params = (w1, b1, w2, b2, w3, b3) in torch-native layout:
      w1: (H, D), b1: (H,), w2: (H, H), b2: (H,), w3: (1, H), b3: (1,).
    """
    w1, b1, w2, b2, w3, b3 = params
    B, D = x.shape
    H = w1.shape[0]

    if tm is None:
        b_pad128 = 128 * pl.cdiv(B, 128)
        tm = min(2048, b_pad128)
        # Prefer >= 2 grid steps so the "parallel" batch axis can actually be
        # sharded across the two TensorCores on v7x (harmless on v5e/v6e).
        if b_pad128 > 128 and b_pad128 // tm < 2:
            tm = 128 * pl.cdiv(b_pad128 // 2, 128)
    num_blocks = pl.cdiv(B, tm)
    B_pad = num_blocks * tm

    # Batch-on-lanes: present x^T (D, B_pad) to the kernel.  Padded batch rows
    # flow through the MLP as finite garbage and are sliced off afterwards.
    xt = jnp.pad(x, ((0, B_pad - B), (0, 0))).T

    # Storage / MXU-input dtype; accumulation stays f32 via preferred_element_type.
    cdt = jnp.bfloat16 if use_bf16 else jnp.float32
    xt_c = xt.astype(cdt)
    w1_c = w1.astype(cdt)
    w2_c = w2.astype(cdt)
    w3_col = w3.reshape(H, 1).astype(cdt)
    b1_col = b1.reshape(H, 1).astype(jnp.float32)
    b2_col = b2.reshape(H, 1).astype(jnp.float32)

    out = pl.pallas_call(
        critic_kernel,
        out_shape=jax.ShapeDtypeStruct((1, B_pad), jnp.float32),
        grid=(num_blocks,),
        in_specs=[
            pl.BlockSpec((D, tm), lambda i: (0, i)),   # x^T: streamed per batch tile
            pl.BlockSpec((H, D), lambda i: (0, 0)),    # W1: resident in VMEM
            pl.BlockSpec((H, 1), lambda i: (0, 0)),    # b1 (column)
            pl.BlockSpec((H, H), lambda i: (0, 0)),    # W2: resident in VMEM
            pl.BlockSpec((H, 1), lambda i: (0, 0)),    # b2 (column)
            pl.BlockSpec((H, 1), lambda i: (0, 0)),    # w3 (column)
        ],
        out_specs=pl.BlockSpec((1, tm), lambda i: (0, i)),  # lane-dense output
        compiler_params=pltpu.CompilerParams(
            dimension_semantics=("parallel",),  # megacore sharding on v7x
        ),
    )(xt_c, w1_c, b1_col, w2_c, b2_col, w3_col)

    # b3 added on the host (avoids a padded (1,1) VMEM block in the kernel);
    # squeeze(-1) is already folded in by the (1, B_pad) output layout.
    return out[0, :B] + b3[0]


def init_critic_params(key, input_dim, hidden_dim):
    """Matches Critic.init_weights(): kaiming_uniform_(nonlinearity='relu'),
    zero biases.  Weights kept in torch-native (out, in) layout."""
    def kaiming_uniform(k, shape):
        fan_in = shape[1]
        bound = jnp.sqrt(2.0) * jnp.sqrt(3.0 / fan_in)   # gain for 'relu'
        return jax.random.uniform(k, shape, jnp.float32, -bound, bound)

    k1, k2, k3 = jax.random.split(key, 3)
    w1 = kaiming_uniform(k1, (hidden_dim, input_dim))    # torch Linear(D, H).weight
    b1 = jnp.zeros((hidden_dim,), jnp.float32)
    w2 = kaiming_uniform(k2, (hidden_dim, hidden_dim))   # torch Linear(H, H).weight
    b2 = jnp.zeros((hidden_dim,), jnp.float32)
    w3 = kaiming_uniform(k3, (1, hidden_dim))            # torch Linear(H, 1).weight
    b3 = jnp.zeros((1,), jnp.float32)
    return (w1, b1, w2, b2, w3, b3)


if __name__ == "__main__":
    key = jax.random.PRNGKey(0)
    kx, kp = jax.random.split(key)

    # CartPole-like obs dim, small hidden; batch of stacked env states
    # (non-multiple of 128 to exercise padding + a 2-block grid).
    batch, input_dim, hidden_dim = 200, 4, 32
    x = jax.random.normal(kx, (batch, input_dim), jnp.float32)
    params = init_critic_params(kp, input_dim, hidden_dim)
    w1, b1, w2, b2, w3, b3 = params

    # Plain-JAX reference of the same forward pass (torch-native layout).
    ref = jnp.maximum(x @ w1.T + b1, 0.0)
    ref = jnp.maximum(ref @ w2.T + b2, 0.0)
    ref = (ref @ w3.T + b3)[:, 0]

    # f32 path (default).
    values = critic_forward(x, params)
    jax.block_until_ready(values)
    assert values.shape == (batch,)
    assert jnp.allclose(values, ref, atol=1e-5, rtol=1e-5)

    # bf16 storage path (halves the O(B) x HBM stream on v6e/v7x); looser tol.
    values_bf16 = critic_forward(x, params, use_bf16=True)
    jax.block_until_ready(values_bf16)
    assert values_bf16.shape == (batch,)
    assert jnp.allclose(values_bf16, ref, atol=5e-2, rtol=2e-2)

    print("KERNEL_OK")
</pallas_src>

<mosaic_0001>
module attributes {stable_mosaic.version = 11 : i64} {
  func.func @critic_kernel(%arg0: i32, %arg1: memref<4x128xf32, #tpu.memory_space<vmem>>, %arg2: memref<32x4xf32, #tpu.memory_space<vmem>>, %arg3: memref<32x1xf32, #tpu.memory_space<vmem>>, %arg4: memref<32x32xf32, #tpu.memory_space<vmem>>, %arg5: memref<32x1xf32, #tpu.memory_space<vmem>>, %arg6: memref<32x1xf32, #tpu.memory_space<vmem>>, %arg7: memref<1x128xf32, #tpu.memory_space<vmem>>) attributes {dimension_semantics = [#tpu.dimension_semantics<parallel>], iteration_bounds = array<i64: 2>, scalar_prefetch = 0 : i64, scratch_operands = 0 : i64, tpu.core_type = #tpu.core_type<tc>, window_params = [{transform_indices = @transform_0, window_bounds = array<i64: 4, 128>}, {pipeline_mode = #tpu.pipeline_mode<synchronous>, transform_indices = @transform_1, window_bounds = array<i64: 32, 4>}, {pipeline_mode = #tpu.pipeline_mode<synchronous>, transform_indices = @transform_2, window_bounds = array<i64: 32, 1>}, {pipeline_mode = #tpu.pipeline_mode<synchronous>, transform_indices = @transform_3, window_bounds = array<i64: 32, 32>}, {pipeline_mode = #tpu.pipeline_mode<synchronous>, transform_indices = @transform_4, window_bounds = array<i64: 32, 1>}, {pipeline_mode = #tpu.pipeline_mode<synchronous>, transform_indices = @transform_5, window_bounds = array<i64: 32, 1>}, {transform_indices = @transform_6, window_bounds = array<i64: 1, 128>}]} {
    %c0 = arith.constant 0 : index
    %c0_0 = arith.constant 0 : index
    %0 = vector.load %arg1[%c0, %c0_0] : memref<4x128xf32, #tpu.memory_space<vmem>>, vector<4x128xf32>
    %c0_1 = arith.constant 0 : index
    %c0_2 = arith.constant 0 : index
    %1 = vector.load %arg2[%c0_1, %c0_2] : memref<32x4xf32, #tpu.memory_space<vmem>>, vector<32x4xf32>
    %cst = arith.constant dense<0.000000e+00> : vector<32x128xf32>
    %2 = tpu.matmul %1, %0, %cst {dimension_numbers = #tpu.dot_dimension_numbers<[1], [0], [0], [1], [0, 0, 1, 1], [], []>} : vector<32x4xf32>, vector<4x128xf32>, vector<32x128xf32> -> vector<32x128xf32>
    %c0_3 = arith.constant 0 : index
    %c0_4 = arith.constant 0 : index
    %3 = vector.load %arg3[%c0_3, %c0_4] : memref<32x1xf32, #tpu.memory_space<vmem>>, vector<32x1xf32>
    %4 = vector.broadcast %3 : vector<32x1xf32> to vector<32x128xf32>
    %5 = arith.addf %2, %4 : vector<32x128xf32>
    %cst_5 = arith.constant 0.000000e+00 : f32
    %6 = vector.broadcast %cst_5 : f32 to vector<32x128xf32>
    %7 = arith.maximumf %5, %6 : vector<32x128xf32>
    %c0_6 = arith.constant 0 : index
    %c0_7 = arith.constant 0 : index
    %8 = vector.load %arg4[%c0_6, %c0_7] : memref<32x32xf32, #tpu.memory_space<vmem>>, vector<32x32xf32>
    %cst_8 = arith.constant dense<0.000000e+00> : vector<32x128xf32>
    %9 = tpu.matmul %8, %7, %cst_8 {dimension_numbers = #tpu.dot_dimension_numbers<[1], [0], [0], [1], [0, 0, 1, 1], [], []>} : vector<32x32xf32>, vector<32x128xf32>, vector<32x128xf32> -> vector<32x128xf32>
    %c0_9 = arith.constant 0 : index
    %c0_10 = arith.constant 0 : index
    %10 = vector.load %arg5[%c0_9, %c0_10] : memref<32x1xf32, #tpu.memory_space<vmem>>, vector<32x1xf32>
    %11 = vector.broadcast %10 : vector<32x1xf32> to vector<32x128xf32>
    %12 = arith.addf %9, %11 : vector<32x128xf32>
    %cst_11 = arith.constant 0.000000e+00 : f32
    %13 = vector.broadcast %cst_11 : f32 to vector<32x128xf32>
    %14 = arith.maximumf %12, %13 : vector<32x128xf32>
    %c0_12 = arith.constant 0 : index
    %c0_13 = arith.constant 0 : index
    %15 = vector.load %arg6[%c0_12, %c0_13] : memref<32x1xf32, #tpu.memory_space<vmem>>, vector<32x1xf32>
    %16 = vector.broadcast %15 : vector<32x1xf32> to vector<32x128xf32>
    %17 = arith.mulf %14, %16 : vector<32x128xf32>
    %cst_14 = arith.constant dense<0.000000e+00> : vector<128xf32>
    %18 = vector.multi_reduction <add>, %17, %cst_14 [0] : vector<32x128xf32> to vector<128xf32>
    %19 = vector.shape_cast %18 : vector<128xf32> to vector<1x128xf32>
    %c0_15 = arith.constant 0 : index
    %c0_16 = arith.constant 0 : index
    %20 = vector.load %arg7[%c0_15, %c0_16] : memref<1x128xf32, #tpu.memory_space<vmem>>, vector<1x128xf32>
    tpu.vector_store %arg7[%c0_15, %c0_16], %19 {strides = array<i32>} : memref<1x128xf32, #tpu.memory_space<vmem>>, vector<1x128xf32>,
    return
  }
  func.func @transform_0(%arg0: i32) -> (i32, i32) {
    %c0_i32 = arith.constant 0 : i32
    %c0_i32_0 = arith.constant 0 : i32
    return %c0_i32, %arg0 : i32, i32
  }
  func.func @transform_1(%arg0: i32) -> (i32, i32) {
    %c0_i32 = arith.constant 0 : i32
    %c0_i32_0 = arith.constant 0 : i32
    %c0_i32_1 = arith.constant 0 : i32
    return %c0_i32, %c0_i32_0 : i32, i32
  }
  func.func @transform_2(%arg0: i32) -> (i32, i32) {
    %c0_i32 = arith.constant 0 : i32
    %c0_i32_0 = arith.constant 0 : i32
    %c0_i32_1 = arith.constant 0 : i32
    return %c0_i32, %c0_i32_0 : i32, i32
  }
  func.func @transform_3(%arg0: i32) -> (i32, i32) {
    %c0_i32 = arith.constant 0 : i32
    %c0_i32_0 = arith.constant 0 : i32
    %c0_i32_1 = arith.constant 0 : i32
    return %c0_i32, %c0_i32_0 : i32, i32
  }
  func.func @transform_4(%arg0: i32) -> (i32, i32) {
    %c0_i32 = arith.constant 0 : i32
    %c0_i32_0 = arith.constant 0 : i32
    %c0_i32_1 = arith.constant 0 : i32
    return %c0_i32, %c0_i32_0 : i32, i32
  }
  func.func @transform_5(%arg0: i32) -> (i32, i32) {
    %c0_i32 = arith.constant 0 : i32
    %c0_i32_0 = arith.constant 0 : i32
    %c0_i32_1 = arith.constant 0 : i32
    return %c0_i32, %c0_i32_0 : i32, i32
  }
  func.func @transform_6(%arg0: i32) -> (i32, i32) {
    %c0_i32 = arith.constant 0 : i32
    %c0_i32_0 = arith.constant 0 : i32
    return %c0_i32, %arg0 : i32, i32
  }
}

</mosaic_0001>

<bundles_post_ra>
// kernel: tpu_custom_call.1
= control target key start
LH: loop header
LB: loop body
LE: loop exit
PB: predicated region body
PF: predicated region fallthrough
CT: control target
= control target key end

     0   :  { %11 = vsyncpa [#allocation3], 0  ;;  %s973_s0 = inlined_call_operand.vmem [shape: f32[4,256], index: 0, kind: input, shape index: {}]   ;;  %s974_s1 = inlined_call_operand.vmem [shape: f32[32,4], index: 1, kind: input, shape index: {}]   ;;  %s975_s2 = inlined_call_operand.vmem [shape: f32[32,1], index: 2, kind: input, shape index: {}]   ;;  %s976_s3 = inlined_call_operand.vmem [shape: f32[32,32], index: 3, kind: input, shape index: {}]   ;;  %s977_s4 = inlined_call_operand.vmem [shape: f32[32,1], index: 4, kind: input, shape index: {}]   ;;  %s978_s5 = inlined_call_operand.vmem [shape: f32[32,1], index: 5, kind: input, shape index: {}]   ;;  %s979_s6 = inlined_call_operand.hbm [shape: f32[1,256], index: 6, kind: output, shape index: {}]  }
   0x1   :  { %13 = vsyncpa [#allocation3 + $0x1], 0  ;;  %s818_s21 = smov 0   ;;  %s820_s22 = smov 0  }
   0x2   :  { %s822_s23 = smov 0   ;;  %s824_s24 = smov 0  }
   0x3 LB: > { %s839_s25 = sadd.s32 4294967295, %s779_s24   ;;  %s617_s26 = sadd.s32 4294967294, %s779_s24   ;;  %s779_s24 = sphi %s824_s24, %s985_s24   ;;  %s775_s23 = sphi %s822_s23, %s984_s23   ;;  %s771_s22 = sphi %s820_s22, %s983_s22   ;;  %s767_s21 = sphi %s818_s21, %s982_s21  }
   0x4   : > { %s843_s27 = sadd.s32 1, %s779_s24   ;;  %s157_s28 = sadd.s32 1, %s775_s23 }
   0x5   : > { %s154_s29 = ssub.s32 %s779_s24, %s843_s27  ;;  %p167_p0 = scmp.ne.s32.totalorder %s775_s23, %s771_s22 }
   0x6   : > { %p155_p1 = scmp.eq.s32.totalorder %s154_s29, 0  ;;  %p168_p2 = scmp.eq.s32.totalorder %s839_s25, 1 }
   0x7   : > { %p173_p3 = scmp.ne.s32.totalorder %s771_s22, %s767_s21  ;;  %p174_p4 = scmp.eq.s32.totalorder %s617_s26, 1 }
   0x8   : > { %s854_s30 = scalar_select %p155_p1, %s775_s23, %s157_s28  }
   0x9   : > { %p856_p5 = por %p168_p2, %p167_p0  ;;  %p860_p6 = por %p174_p4, %p173_p3 }
   0xa   : > { %p620_p7 = scmp.ge.s32.totalorder %s779_s24, 1  ;;  %p214_p8 = scmp.lt.s32.totalorder %s779_s24, 3 }
   0xc   : > { %p215_p9 = pnand %p620_p7, %p214_p8 }
   0xd   : > { %p242_p10 = scmp.lt.s32.totalorder (!%p215_p9), %s839_s25, 1  ;;  %s240_s9 = sand.u32 (!%p215_p9), 1, %s771_s22  }
   0xe   : > { %218 = sbr.rel (%p215_p9) target bundleno = 467 (0x1d3), region = 44  ;;  %s631_s10 = sshll.u32 (!%p215_p9), %s839_s25, 4 }
   0xf   : > { %s241_s11 = scalar_lea.vmem (!%p215_p9), [#allocation2], %s240_s9  ;;  %s560_s15 = scalar_lea.hbm (!%p215_p9), %s979_s6, %s631_s10 }
  0x10   : > { %s562_s12 = sshll.u32 (!%p215_p9), %s241_s11, 4  ;;  %s782_s18 = smov (!%p215_p9), [#allocation2]   ;;  %s563_s12 = int_to_ptr.vmem [resolvable:$true] %s562_s12 }
  0x11   : > { %s719_s17 = scalar_lea.vmem (!%p215_p9), %s563_s12, 16  ;;  %s723_s19 = sshll.u32 (!%p215_p9), %s782_s18, 4  ;;  %s724_s19 = int_to_ptr.vmem [resolvable:$false] %s723_s19 }
  0x12   : > { %p720_p11 = scmp.ne.s32.totalorder (!%p215_p9), %s563_s12, %s719_s17  ;;  %p726_p0 = scmp.lt.s32.totalorder (!%p215_p9), %s563_s12, %s724_s19 }
  0x13   : > { %v247_v0 = vld [vmem:[%s974_s1] sm:$0xff]  ;;  %vm275_vm0 = vcmask 31744   ;;  %v254_v1 = vld [vmem:[%s975_s2 + $0x18] sm:$0xff]  ;;  %s243_s13 = scalar_select %p242_p10, %s839_s25, 1  ;;  %v781_v2 = vmov 0   ;;  %v252_v3 = vld [vmem:[%s975_s2 + $0x8] sm:$0xff] }
  0x14   : > { %649 = vmatprep.mubr.msk.f32.mxu0 %vm275_vm0, %v247_v0  ;;  %717 = vset.pattern.permute.xlu0 %v781_v2  ;;  %vm288_vm1 = vcmask 1043456   ;;  %v253_v4 = vld [vmem:[%s975_s2 + $0x10] sm:$0xff]  ;;  %v251_v5 = vld [vmem:[%s975_s2] sm:$0xff]  ;;  %v248_v7 = vld [vmem:[%s974_s1 + $0x8] sm:$0xff]  ;;  %vm409_vm2 = vcmask 261120   ;;  %p721_p12 = pnand %p720_p11, %p856_p5  ;;  %s725_s25 = scalar_lea.vmem %s724_s19, 32 }
  0x15   : > { %718 = vset.pattern.permute.xlu1 %v781_v2  ;;  %272 = vperm.xlu0 %717, %v254_v1   ;;  %s621_s16 = sshll.u32 %s243_s13, 2  ;;  %v249_v8 = vld [vmem:[%s974_s1 + $0x10] sm:$0xff]  ;;  %v385_v9 = vld [vmem:[%s977_s4] sm:$0xff]  ;;  %v386_v10 = vld [vmem:[%s977_s4 + $0x8] sm:$0xff]  ;;  %p727_p1 = scmp.lt.s32.totalorder %s725_s25, %s719_s17 }
  0x16   : > { %262 = vperm.xlu1 %718, %v252_v3   ;;  %s245_s26 = scalar_lea.vmem %s973_s0, %s621_s16  ;;  %v250_v11 = vld [vmem:[%s974_s1 + $0x18] sm:$0xff]  ;;  %v387_v12 = vld [vmem:[%s977_s4 + $0x10] sm:$0xff]  ;;  %v511_v14 = vld [vmem:[%s978_s5] sm:$0xff]  ;;  %s550_s16 = scalar_lea.sflag [#allocation3], %s240_s9 }
  0x17   : > { %v246_v6 = vld [vmem:[%s245_s26] sm:$0xf]  ;;  %v388_v13 = vld [vmem:[%s977_s4 + $0x18] sm:$0xff]  ;;  %v512_v15 = vld [vmem:[%s978_s5 + $0x8] sm:$0xff]  ;;  %p722_p13 = pneg %p721_p12  ;;  %p728_p2 = por %p727_p1, %p726_p0 }
  0x18   : > { %647 = vmatprep.subr.msk.mxu0 %vm288_vm1, %v246_v6  ;;  %v513_v16 = vld [vmem:[%s978_s5 + $0x10] sm:$0xff]  ;;  %v514_v17 = vld [vmem:[%s978_s5 + $0x18] sm:$0xff]  ;;  %v381_v18 = vld [vmem:[%s976_s3] sm:$0xff] }
  0x19   : > { %267 = vperm.xlu0 %717, %v253_v4   ;;  %648 = vmatpush3.msk.msra.mxu0 %vm288_vm1, %v246_v6  ;;  %v383_v19 = vld [vmem:[%s976_s3 + $0x10] sm:$0xff]  ;;  %v382_v36 = vld [vmem:[%s976_s3 + $0x8] sm:$0xff]  ;;  %v384_v37 = vld [vmem:[%s976_s3 + $0x18] sm:$0xff]  ;;  %p729_p3 = pnand %p728_p2, %p722_p13 }
  0x1a   : > { %257 = vperm.xlu1 %718, %v251_v5   ;;  %650 = vmatmul.mubr.msk.f32.vlgmr.msra.gmra.mxu0 %vm275_vm0, %v248_v7 }
  0x1b   : > { %652 = vmatprep.mubr.msk.f32.mxu0 %vm275_vm0, %v249_v8  ;;  %666 = vmatprep.mubr.msk.f32.mxu1 %vm409_vm2, %v383_v19 }
  0x1d   : > { %391 = vperm.xlu0 %717, %v385_v9  }
  0x1e   : > { %396 = vperm.xlu1 %718, %v386_v10   ;;  %653 = vmatmul.mubr.msk.f32.gmra.mxu0 %vm275_vm0, %v250_v11 }
  0x1f   : > { %663 = vmatprep.mubr.msk.f32.mxu0 %vm409_vm2, %v381_v18 }
  0x21   : > { %401 = vperm.xlu0 %717, %v387_v12  }
  0x22   : > { %406 = vperm.xlu1 %718, %v388_v13  }
  0x25   : > { %517 = vperm.xlu0 %717, %v511_v14  }
  0x26   : > { %522 = vperm.xlu1 %718, %v512_v15  }
  0x29   : > { %527 = vperm.xlu0 %717, %v513_v16  }
  0x2a   : > { %532 = vperm.xlu1 %718, %v514_v17  }
  0x90   : > { %v273_v20 = vpop.permute.xlu0 %272 }
  0x91   : > { %v263_v22 = vpop.permute.xlu1 %262 }
  0x94   : > { %v268_v26 = vpop.permute.xlu0 %267 }
  0x95   : > { %v258_v31 = vpop.permute.xlu1 %257 }
  0x98   : > { %v392_v38 = vpop.permute.xlu0 %391 }
  0x99   : > { %v397_v39 = vpop.permute.xlu1 %396 }
  0x9c   : > { %v402_v40 = vpop.permute.xlu0 %401 }
  0x9d   : > { %v407_v41 = vpop.permute.xlu1 %406 }
  0xa0   : > { %v518_v44 = vpop.permute.xlu0 %517 }
  0xa1   : > { %v523_v52 = vpop.permute.xlu1 %522 }
  0xa4   : > { %v528_v58 = vpop.permute.xlu0 %527 }
  0xa5   : > { %v533_v61 = vpop.permute.xlu1 %532 }
  0xda   : > { %v651_v21 = vpop.f32.mrf.mxu0 }
  0xdb   : > { %v364_v28 = vadd.f32 %v651_v21, %v263_v22 }
  0xdc   : > { %v358_v23 = vpop.f32.mrf.mxu0 }
  0xdd   : > { %v359_v32 = vadd.f32 %v358_v23, %v258_v31  ;;  %v378_v34 = vmax.f32 %v364_v28, 0.0 }
  0xde   : > { %v654_v24 = vpop.f32.mrf.mxu0 }
  0xdf   : > { %v374_v25 = vadd.f32 %v654_v24, %v273_v20  ;;  %v377_v35 = vmax.f32 %v359_v32, 0.0 }
  0xe0   : > { %v368_v27 = vpop.f32.mrf.mxu0 }
  0xe1   : > { %v380_v29 = vmax.f32 %v374_v25, 0.0  ;;  %v369_v30 = vadd.f32 %v368_v27, %v268_v26 }
  0xe3   : > { %v379_v33 = vmax.f32 %v369_v30, 0.0  ;;  %655 = vmatprep.subr.mxu0 %v380_v29  ;;  %669 = vmatprep.subr.mxu1 %v380_v29 }
  0xe4   : > { %656 = vmatpush3.msra.mxu0 %v380_v29  ;;  %673 = vmatpush3.msra.mxu1 %v380_v29 }
  0xe5   : > { %657 = vmatprep.subr.mxu0 %v379_v33  ;;  %670 = vmatprep.subr.mxu1 %v379_v33 }
  0xe6   : > { %658 = vmatpush3.msra.mxu0 %v379_v33  ;;  %674 = vmatpush3.msra.mxu1 %v379_v33 }
  0xe7   : > { %659 = vmatprep.subr.mxu0 %v378_v34  ;;  %671 = vmatprep.subr.mxu1 %v378_v34 }
  0xe8   : > { %660 = vmatpush3.msra.mxu0 %v378_v34  ;;  %675 = vmatpush3.msra.mxu1 %v378_v34 }
  0xe9   : > { %661 = vmatprep.subr.mxu0 %v377_v35  ;;  %672 = vmatprep.subr.mxu1 %v377_v35 }
  0xea   : > { %662 = vmatpush3.msra.mxu0 %v377_v35  ;;  %676 = vmatpush3.msra.mxu1 %v377_v35 }
  0xeb   : > { %664 = vmatmul.mubr.msk.f32.vlgmr.msra.gmra.mxu0 %vm409_vm2, %v382_v36  ;;  %667 = vmatmul.mubr.msk.f32.vlgmr.msra.gmra.mxu1 %vm409_vm2, %v384_v37 }
 0x1ab   : > { %v665_v42 = vpop.f32.mrf.mxu0  ;;  %v668_v43 = vpop.f32.mrf.mxu1 }
 0x1ac   : > { %v494_v45 = vadd.f32 %v665_v42, %v397_v39  ;;  %v504_v49 = vadd.f32 %v668_v43, %v407_v41 }
 0x1ad   : > { %v488_v46 = vpop.f32.mrf.mxu0  ;;  %v498_v47 = vpop.f32.mrf.mxu1 }
 0x1ae   : > { %v508_v48 = vmax.f32 %v494_v45, 0.0  ;;  %v489_v50 = vadd.f32 %v488_v46, %v392_v38  ;;  %v499_v51 = vadd.f32 %v498_v47, %v402_v40  ;;  %v510_v56 = vmax.f32 %v504_v49, 0.0 }
 0x1b0   : > { %v507_v53 = vmax.f32 %v489_v50, 0.0  ;;  %v509_v54 = vmax.f32 %v499_v51, 0.0  ;;  %v536_v55 = vmul.f32 %v523_v52, %v508_v48  ;;  %v538_v62 = vmul.f32 %v533_v61, %v510_v56 }
 0x1b2   : > { %v535_v57 = vmul.f32 %v518_v44, %v507_v53  ;;  %v537_v60 = vmul.f32 %v528_v58, %v509_v54 }
 0x1b4   : > { %v539_v59 = vadd.f32 %v536_v55, %v535_v57 }
 0x1b6   : > { %v540_v63 = vadd.f32 %v539_v59, %v537_v60 }
 0x1b8   : > { %v541_v0 = vadd.f32 %v540_v63, %v538_v62 }
 0x1ba   : > { %v542_v1 = vrot.slane %v541_v0, 4 }
 0x1bc   : > { %v543_v2 = vadd.f32 %v542_v1, %v541_v0 }
 0x1be   : > { %v544_v3 = vrot.slane %v543_v2, 2 }
 0x1c0   : > { %v545_v4 = vadd.f32 %v544_v3, %v543_v2 }
 0x1c2   : > { %v546_v5 = vrot.slane %v545_v4, 1 }
 0x1c4   : > { %v547_v6 = vadd.f32 %v546_v5, %v545_v4 }
 0x1c6   : > { %548 = vst [vmem:[%s241_s11] sm:$0x1] %v547_v6 }
 0x1c7   : > { %732 = shalt.err (!%p729_p3)
}
 0x1c8   : > { %s733_s20 = scalar_lea.hbm %s560_s15, 16  ;;  %s737_s29 = scalar_lea.hbm %s979_s6, 32 }
 0x1c9   : > { %p734_p4 = scmp.ne.s32.totalorder %s560_s15, %s733_s20  ;;  %p738_p9 = scmp.lt.s32.totalorder %s560_s15, %s979_s6 }
 0x1ca   : > { %p739_p10 = scmp.lt.s32.totalorder %s737_s29, %s733_s20 }
 0x1cb   : > { %p735_p7 = pnand %p734_p4, %p856_p5 }
 0x1cc   : > { %p740_p11 = por %p739_p10, %p738_p9 }
 0x1cd   : > { %p736_p8 = pneg %p735_p7 }
 0x1cf   : > { %p741_p12 = pnand %p740_p11, %p736_p8 }
 0x1d1   : > { %744 = shalt.err (!%p741_p12)
}
 0x1d2   : > { %677 = dma.vmem_to_hbm [thread:$0]  (%p856_p5), %s563_s12, 16, %s560_s15, %s550_s16  }
 0x1d3 PF: > { %p683_p13 = scmp.ge.s32.totalorder %s779_s24, 2  ;;  %s574_s11 = sand.u32 1, %s767_s21  }
 0x1d4   : > { %s575_s13 = scalar_lea.sflag [#allocation3], %s574_s11 }
 0x1d5   : > { %p680_p0 = pnand %p683_p13, %p860_p6 }
 0x1d7   : > { %p681_p1 = pneg %p680_p0 }
 0x1d9   : > { %762 = dma.done.wait (%p681_p1), %s575_s13, 16  }
 0x1da   : > { %764 = vsyncadd (%p681_p1), %s575_s13, 4294967280  ;;  %p16_p2 = scmp.ge.s32.totalorder %s843_s27, 4   ;;  %s982_s21 = smov %s771_s22 }
 0x1db   : > { %s983_s22 = smov %s775_s23  ;;  %s984_s23 = smov %s854_s30 }
 0x1dc   : > { %s985_s24 = smov %s843_s27  ;;  %18 = sbr.rel (!%p16_p2) target bundleno = 3 (0x3), region = 79 }
 0x1e1   :  { %579 = vsyncpa [#allocation3], 1 }
 0x1e2   :  { %581 = vsyncpa [#allocation3 + $0x1], 1 }

</bundles_post_ra>
